<compile_context>
chip_gen: v6e
topology: v6e:2x2x1
jax: 0.10.0
libtpu: 0.0.40
codegen_flags: <defaults>
</compile_context>

<pallas_src>
import functools

import jax
import jax.numpy as jnp
from jax.experimental import pallas as pl
from jax.experimental.pallas import tpu as pltpu


def qnet_kernel(x_ref, w_ref, b_ref, o_ref, acc_ref):
    # x_ref:   (tm, tk)  activations
    # w_ref:   (tn, tk)  weights in PyTorch (dout, hidden) layout
    # b_ref:   (1,  tn)  bias tile
    # o_ref:   (tm, tn)  output tile
    # acc_ref: (tm, tn)  f32 accumulator, persists across the k (reduction) axis
    k = pl.program_id(2)

    @pl.when(k == 0)
    def _init():
        acc_ref[...] = jnp.zeros_like(acc_ref)

    # x @ W.T without any wrapper transpose: contract last dims on the MXU.
    acc_ref[...] += jax.lax.dot_general(
        x_ref[...],
        w_ref[...],
        dimension_numbers=(((1,), (1,)), ((), ())),
        preferred_element_type=jnp.float32,
    )

    @pl.when(k == pl.num_programs(2) - 1)
    def _finalize():
        # Bias added once, in the epilogue only.
        o_ref[...] = (acc_ref[...] + b_ref[...]).astype(o_ref.dtype)


def _pick_tile(dim, target):
    """Use `target` if it evenly divides `dim`, else fall back to the full dim."""
    if dim >= target and dim % target == 0:
        return target
    return dim


@functools.partial(jax.jit, static_argnames=("tm", "tn", "tk"))
def q_net_forward(x, weight, bias, *, tm=256, tn=256, tk=512):
    """Pallas equivalent of Q_Net.forward: q = x @ weight.T + bias.

    x:      (B, hidden_dim)
    weight: (dout, hidden_dim)   PyTorch nn.Linear layout (NOT transposed here)
    bias:   (dout,)
    """
    B, H = x.shape
    D, H2 = weight.shape
    assert H == H2, (x.shape, weight.shape)

    tm = _pick_tile(B, tm)
    tn = _pick_tile(D, tn)
    tk = _pick_tile(H, tk)

    b2 = bias.reshape(1, D)
    grid = (B // tm, D // tn, H // tk)

    return pl.pallas_call(
        qnet_kernel,
        out_shape=jax.ShapeDtypeStruct((B, D), x.dtype),
        grid_spec=pltpu.PrefetchScalarGridSpec(
            num_scalar_prefetch=0,
            grid=grid,
            in_specs=[
                pl.BlockSpec((tm, tk), lambda i, j, k: (i, k)),  # x
                pl.BlockSpec((tn, tk), lambda i, j, k: (j, k)),  # weight (D, H)
                pl.BlockSpec((1, tn), lambda i, j, k: (0, j)),   # bias
            ],
            out_specs=pl.BlockSpec((tm, tn), lambda i, j, k: (i, j)),
            scratch_shapes=[pltpu.VMEM((tm, tn), jnp.float32)],
        ),
        compiler_params=pltpu.CompilerParams(
            dimension_semantics=("parallel", "parallel", "arbitrary"),
        ),
    )(x, weight, b2)


if __name__ == "__main__":
    key = jax.random.PRNGKey(0)
    kx, kw, kb, kx2, kw2, kb2 = jax.random.split(key, 6)

    # --- Small-shape check (matches the module: nn.Linear(hidden_dim, dout)) ---
    hidden_dim, dout, batch = 32, 16, 8
    x = jax.random.normal(kx, (batch, hidden_dim), dtype=jnp.float32)
    weight = jax.random.normal(kw, (dout, hidden_dim), dtype=jnp.float32) * 0.1
    bias = jax.random.normal(kb, (dout,), dtype=jnp.float32) * 0.1

    q = q_net_forward(x, weight, bias)
    jax.block_until_ready(q)
    ref = x @ weight.T + bias
    assert q.shape == (batch, dout)
    assert jnp.allclose(q, ref, atol=1e-5, rtol=1e-5)

    # --- Tiled-path check (exercises the grid, accumulator and epilogue) ---
    B2, H2, D2 = 256, 1024, 256
    x2 = jax.random.normal(kx2, (B2, H2), dtype=jnp.float32)
    w2 = jax.random.normal(kw2, (D2, H2), dtype=jnp.float32) * 0.05
    b2 = jax.random.normal(kb2, (D2,), dtype=jnp.float32) * 0.05

    q2 = q_net_forward(x2, w2, b2)
    jax.block_until_ready(q2)
    ref2 = x2 @ w2.T + b2
    assert q2.shape == (B2, D2)
    assert jnp.allclose(q2, ref2, atol=1e-3, rtol=1e-3)

    print("KERNEL_OK")
</pallas_src>

<mosaic_0001>
module attributes {stable_mosaic.version = 11 : i64} {
  func.func @qnet_kernel(%arg0: i32, %arg1: i32, %arg2: i32, %arg3: memref<8x32xf32, #tpu.memory_space<vmem>>, %arg4: memref<16x32xf32, #tpu.memory_space<vmem>>, %arg5: memref<1x16xf32, #tpu.memory_space<vmem>>, %arg6: memref<8x16xf32, #tpu.memory_space<vmem>>, %arg7: memref<8x16xf32, #tpu.memory_space<vmem>>) attributes {dimension_semantics = [#tpu.dimension_semantics<parallel>, #tpu.dimension_semantics<parallel>, #tpu.dimension_semantics<arbitrary>], iteration_bounds = array<i64: 1, 1, 1>, scalar_prefetch = 0 : i64, scratch_operands = 1 : i64, tpu.core_type = #tpu.core_type<tc>, window_params = [{transform_indices = @transform_0, window_bounds = array<i64: 8, 32>}, {transform_indices = @transform_1, window_bounds = array<i64: 16, 32>}, {transform_indices = @transform_2, window_bounds = array<i64: 1, 16>}, {transform_indices = @transform_3, window_bounds = array<i64: 8, 16>}]} {
    %c0_i32 = arith.constant 0 : i32
    %0 = arith.cmpi eq, %arg2, %c0_i32 : i32
    %1 = arith.extui %0 : i1 to i32
    %c0_i32_0 = arith.constant 0 : i32
    %2 = arith.cmpi ne, %1, %c0_i32_0 : i32
    scf.if %2 {
      %cst_10 = arith.constant 0.000000e+00 : f32
      %12 = vector.broadcast %cst_10 : f32 to vector<8x16xf32>
      %c0_11 = arith.constant 0 : index
      %c0_12 = arith.constant 0 : index
      %13 = vector.load %arg7[%c0_11, %c0_12] : memref<8x16xf32, #tpu.memory_space<vmem>>, vector<8x16xf32>
      tpu.vector_store %arg7[%c0_11, %c0_12], %12 {strides = array<i32>} : memref<8x16xf32, #tpu.memory_space<vmem>>, vector<8x16xf32>,
    } else {
    }
    %c0 = arith.constant 0 : index
    %c0_1 = arith.constant 0 : index
    %3 = vector.load %arg7[%c0, %c0_1] : memref<8x16xf32, #tpu.memory_space<vmem>>, vector<8x16xf32>
    %c0_2 = arith.constant 0 : index
    %c0_3 = arith.constant 0 : index
    %4 = vector.load %arg3[%c0_2, %c0_3] : memref<8x32xf32, #tpu.memory_space<vmem>>, vector<8x32xf32>
    %c0_4 = arith.constant 0 : index
    %c0_5 = arith.constant 0 : index
    %5 = vector.load %arg4[%c0_4, %c0_5] : memref<16x32xf32, #tpu.memory_space<vmem>>, vector<16x32xf32>
    %cst = arith.constant dense<0.000000e+00> : vector<8x16xf32>
    %6 = tpu.matmul %4, %5, %cst {dimension_numbers = #tpu.dot_dimension_numbers<[1], [1], [0], [0], [0, 0, 1, 0], [], []>} : vector<8x32xf32>, vector<16x32xf32>, vector<8x16xf32> -> vector<8x16xf32>
    %7 = arith.addf %3, %6 : vector<8x16xf32>
    %c0_6 = arith.constant 0 : index
    %c0_7 = arith.constant 0 : index
    %8 = vector.load %arg7[%c0_6, %c0_7] : memref<8x16xf32, #tpu.memory_space<vmem>>, vector<8x16xf32>
    tpu.vector_store %arg7[%c0_6, %c0_7], %7 {strides = array<i32>} : memref<8x16xf32, #tpu.memory_space<vmem>>, vector<8x16xf32>,
    %c0_i32_8 = arith.constant 0 : i32
    %9 = arith.cmpi eq, %arg2, %c0_i32_8 : i32
    %10 = arith.extui %9 : i1 to i32
    %c0_i32_9 = arith.constant 0 : i32
    %11 = arith.cmpi ne, %10, %c0_i32_9 : i32
    scf.if %11 {
      %c0_10 = arith.constant 0 : index
      %c0_11 = arith.constant 0 : index
      %12 = vector.load %arg7[%c0_10, %c0_11] : memref<8x16xf32, #tpu.memory_space<vmem>>, vector<8x16xf32>
      %c0_12 = arith.constant 0 : index
      %c0_13 = arith.constant 0 : index
      %13 = vector.load %arg5[%c0_12, %c0_13] : memref<1x16xf32, #tpu.memory_space<vmem>>, vector<1x16xf32>
      %14 = vector.broadcast %13 : vector<1x16xf32> to vector<8x16xf32>
      %15 = arith.addf %12, %14 : vector<8x16xf32>
      %c0_14 = arith.constant 0 : index
      %c0_15 = arith.constant 0 : index
      %16 = vector.load %arg6[%c0_14, %c0_15] : memref<8x16xf32, #tpu.memory_space<vmem>>, vector<8x16xf32>
      tpu.vector_store %arg6[%c0_14, %c0_15], %15 {strides = array<i32>} : memref<8x16xf32, #tpu.memory_space<vmem>>, vector<8x16xf32>,
    } else {
    }
    return
  }
  func.func @transform_0(%arg0: i32, %arg1: i32, %arg2: i32) -> (i32, i32) {
    %c0_i32 = arith.constant 0 : i32
    return %arg0, %arg2 : i32, i32
  }
  func.func @transform_1(%arg0: i32, %arg1: i32, %arg2: i32) -> (i32, i32) {
    %c0_i32 = arith.constant 0 : i32
    return %arg1, %arg2 : i32, i32
  }
  func.func @transform_2(%arg0: i32, %arg1: i32, %arg2: i32) -> (i32, i32) {
    %c0_i32 = arith.constant 0 : i32
    %c0_i32_0 = arith.constant 0 : i32
    return %c0_i32, %arg1 : i32, i32
  }
  func.func @transform_3(%arg0: i32, %arg1: i32, %arg2: i32) -> (i32, i32) {
    %c0_i32 = arith.constant 0 : i32
    return %arg0, %arg1 : i32, i32
  }
}

</mosaic_0001>

<bundles_post_ra>
// kernel: q_net_forward.1
= control target key start
LH: loop header
LB: loop body
LE: loop exit
PB: predicated region body
PF: predicated region fallthrough
CT: control target
= control target key end

     0   :  { %8 = vsyncpa [#allocation4], 0  ;;  %s292_s0 = inlined_call_operand.hbm [shape: f32[8,32], index: 0, kind: input, shape index: {}]   ;;  %s293_s1 = inlined_call_operand.hbm [shape: f32[16,32], index: 1, kind: input, shape index: {}]   ;;  %s294_s2 = inlined_call_operand.vmem [shape: f32[1,16], index: 2, kind: input, shape index: {}]   ;;  %s295_s3 = inlined_call_operand.hbm [shape: f32[8,16], index: 3, kind: output, shape index: {}]  }
   0x1   :  { %9 = vsyncpa [#allocation7], 0 }
   0x2   :  { %10 = vsyncpa [#allocation5], 0  ;;  %s250_s12 = smov [#allocation3]   ;;  %s251_s14 = smov [#allocation6]  }
   0x3   :  { %s17_s13 = sshll.u32 %s250_s12, 4  ;;  %s26_s15 = sshll.u32 %s251_s14, 4  ;;  %s18_s13 = int_to_ptr.vmem [resolvable:$true] %s17_s13  ;;  %s27_s15 = int_to_ptr.vmem [resolvable:$true] %s26_s15 }
   0x4   :  { %s192_s16 = scalar_lea.vmem %s18_s13, 128  ;;  %p197_p1 = scmp.lt.s32.totalorder %s18_s13, %s18_s13 }
   0x5   :  { %p193_p0 = scmp.ne.s32.totalorder %s18_s13, %s192_s16  ;;  %p198_p2 = scmp.lt.s32.totalorder %s192_s16, %s192_s16 }
   0x7   :  { %p199_p3 = por %p198_p2, %p197_p1 }
   0x9   :  { %p200_p4 = pnand %p199_p3, %p193_p0 }
   0xb   :  { %203 = shalt.err (!%p200_p4)
}
   0xc   :  { %20 = dma.hbm_to_vmem [thread:$0]  %s292_s0, 128, %s18_s13, [#allocation4]  }
   0xd   :  { %s212_s19 = scalar_lea.vmem %s27_s15, 256  ;;  %p217_p6 = scmp.lt.s32.totalorder %s27_s15, %s27_s15 }
   0xe   :  { %p213_p5 = scmp.ne.s32.totalorder %s27_s15, %s212_s19  ;;  %p218_p7 = scmp.lt.s32.totalorder %s212_s19, %s212_s19 }
  0x10   :  { %p219_p8 = por %p218_p7, %p217_p6 }
  0x12   :  { %p220_p9 = pnand %p219_p8, %p213_p5 }
  0x14   :  { %223 = shalt.err (!%p220_p9)
}
  0x15   :  { %s252_s20 = smov 128   ;;  %s253_s21 = smov 8  }
  0x16   :  { %32 = dma.hbm_to_vmem [thread:$0]  %s293_s1, 256, %s27_s15, [#allocation7], %s252_s20, %s252_s20, %s253_s21  }
  0x17   :  { %244 = dma.done.wait [#allocation4], 128  }
  0x18   :  { %245 = vsyncadd [#allocation4], 4294967168 }
  0x19   :  { %246 = dma.done.wait [#allocation7], 256  }
  0x1a   :  { %247 = vsyncadd [#allocation7], 4294967040  ;;  %vm45_vm0 = vcmask 130048   ;;  %v254_v0 = vmov 0.0   ;;  %vm255_vm1 = vmmov 0   ;;  %vm51_vm2 = vcmask 261120  }
  0x1b   :  { %170 = vmatprep.subr.mxu0 %v254_v0  ;;  %174 = vmatprep.mubr.msk.f32.mxu0 %vm255_vm1, %v254_v0  ;;  %46 = vst.msk [vmem:[#allocation2] sm:$0xff] %vm45_vm0, %v254_v0  ;;  %v50_v1 = vld [vmem:[#allocation6 + $0x8] sm:$0xff]  ;;  %v49_v2 = vld [vmem:[#allocation6] sm:$0xff]  ;;  %v48_v3 = vld [vmem:[#allocation3] sm:$0xff]  ;;  %s256_s24 = smov [#allocation8]  }
  0x1c   :  { %171 = vmatpush3.xpose.msk.msra.mxu0 %vm51_vm2, %v50_v1  ;;  %v166_v8 = vld [vmem:[%s294_s2] ss:$0 sm:$0xff]  ;;  %s153_s25 = sshll.u32 %s256_s24, 4  ;;  %s154_s25 = int_to_ptr.vmem [resolvable:$true] %s153_s25 }
  0x1d   :  { %172 = vmatprep.subr.mxu0 %v254_v0  ;;  %s224_s26 = scalar_lea.vmem %s154_s25, 128  ;;  %p229_p11 = scmp.lt.s32.totalorder %s154_s25, %s154_s25 }
  0x1e   :  { %p225_p10 = scmp.ne.s32.totalorder %s154_s25, %s224_s26  ;;  %p230_p12 = scmp.lt.s32.totalorder %s224_s26, %s224_s26 }
  0x20   :  { %173 = vmatpush3.xpose.msk.msra.mxu0 %vm51_vm2, %v49_v2  ;;  %p231_p13 = por %p230_p12, %p229_p11 }
  0x22   :  { %v47_v4 = vld [vmem:[#allocation2] sm:$0xff]  ;;  %p232_p0 = pnand %p231_p13, %p225_p10 }
  0x23   :  { %175 = vmatmul.mubr.msk.f32.vlgmr.msra.gmra.mxu0 %vm51_vm2, %v48_v3 }
  0xe3   :  { %v127_v5 = vpop.f32.mrf.mxu0 }
  0xe4   :  { %v131_v6 = vadd.f32 %v127_v5, %v47_v4 }
  0xe5   :  { %v176_v7 = vpop.f32.mrf.mxu0 }
  0xe6   :  { %133 = vst.msk [vmem:[#allocation2] sm:$0xff] %vm45_vm0, %v131_v6 }
  0xed   :  { %v137_v9 = vld [vmem:[#allocation2] sm:$0xff] }
  0xee   :  { %v145_v10 = vadd.f32 %v166_v8, %v137_v9 }
  0xf0   :  { %146 = vst.msk [vmem:[#allocation8] sm:$0xff] %vm45_vm0, %v145_v10 }
  0xf1   :  { %235 = shalt.err (!%p232_p0)
}
  0xf2   :  { %156 = dma.vmem_to_hbm [thread:$0]  %s154_s25, 128, %s295_s3, [#allocation5]  }
  0xf3   :  { %248 = dma.done.wait [#allocation5], 128  }
  0xf4   :  { %249 = vsyncadd [#allocation5], 4294967168 }
  0xf5   :  { %160 = vsyncpa [#allocation4], 1 }
  0xf6   :  { %161 = vsyncpa [#allocation7], 1 }
  0xf7   :  { %162 = vsyncpa [#allocation5], 1 }

</bundles_post_ra>
